<compile_context>
chip_gen: v6e
topology: v6e:2x2x1
jax: 0.10.0
libtpu: 0.0.40
codegen_flags: <defaults>
</compile_context>

<pallas_src>
import jax
import jax.numpy as jnp
from jax.experimental import pallas as pl
from jax.experimental.pallas import tpu as pltpu


OUT_PAD = 8        # output_dim 3 -> 8 (full-dim block; 16x less writeback than 128-f32)
_MIN_SPLIT = 512   # only force a 2-step grid (megacore) when batch >= 2 * this


def _round_up(n: int, m: int) -> int:
    return ((n + m - 1) // m) * m


def mlp_kernel(x_ref, w1_ref, b1_ref, w2_ref, b2_ref, w3_ref, b3_ref, o_ref):
    # x tile (tb, in_dim) f32 -> bf16 right before the MXU dot (tiny VPU cost).
    x = x_ref[...].astype(jnp.bfloat16)

    # All matmuls: native bf16 x bf16 with f32 accumulation. Bias-add and ReLU
    # stay on the f32 accumulator; activations are cast to bf16 only at the
    # point of the next dot (keeps v5e's VPU in f32).
    h1 = jnp.dot(x, w1_ref[...], preferred_element_type=jnp.float32) + b1_ref[...]
    h1 = jnp.maximum(h1, 0.0)

    h2 = jnp.dot(h1.astype(jnp.bfloat16), w2_ref[...],
                 preferred_element_type=jnp.float32) + b2_ref[...]
    h2 = jnp.maximum(h2, 0.0)

    out = jnp.dot(h2.astype(jnp.bfloat16), w3_ref[...],
                  preferred_element_type=jnp.float32) + b3_ref[...]

    # (tb, 8) f32 store; wrapper slices back to the real 3 columns.
    o_ref[...] = out.astype(o_ref.dtype)


def mlp_forward(x, params, *, batch_tile=2048):
    """x: (batch, input_dim) f32.  params: f32, weights stored as (in, out)."""
    w1, b1, w2, b2, w3, b3 = params
    batch, input_dim = x.shape
    hidden = w1.shape[1]
    out_dim = w3.shape[1]

    b1 = jnp.reshape(b1, (1, hidden)).astype(jnp.float32)
    b2 = jnp.reshape(b2, (1, hidden)).astype(jnp.float32)
    b3 = jnp.reshape(b3, (1, out_dim)).astype(jnp.float32)

    # ---- batch tile selection --------------------------------------------
    tb = min(batch_tile, _round_up(batch, 16))
    # v7x megacore: keep >= 2 grid steps when the batch is big enough to split
    # across the two TensorCores (harmless on v5e/v6e).
    if batch >= 2 * _MIN_SPLIT and pl.cdiv(batch, tb) < 2:
        tb = _round_up(pl.cdiv(batch, 2), 16)
    padded_batch = _round_up(batch, tb)
    grid = (padded_batch // tb,)

    # x stays f32, unpadded in K (block (tb, input_dim) equals the full last
    # dim); only the batch dim is padded, and only when necessary.
    x_p = x if padded_batch == batch else jnp.pad(
        x, ((0, padded_batch - batch), (0, 0)))

    # Tiny resident weights in bf16 (native MXU operands). w3/b3 padded to 8
    # output columns so the output block is a legal full-dim block.
    w1_p = w1.astype(jnp.bfloat16)
    w2_p = w2.astype(jnp.bfloat16)
    w3_p = jnp.pad(w3, ((0, 0), (0, OUT_PAD - out_dim))).astype(jnp.bfloat16)
    b3_p = jnp.pad(b3, ((0, 0), (0, OUT_PAD - out_dim)))

    flops = 2 * padded_batch * (input_dim * hidden + hidden * hidden + hidden * OUT_PAD)
    bytes_accessed = (
        x_p.size * 4                                          # x read (f32)
        + (w1_p.size + w2_p.size + w3_p.size) * 2             # bf16 weights
        + (b1.size + b2.size + b3_p.size) * 4                 # f32 biases
        + padded_batch * OUT_PAD * 4                          # f32 output write
    )

    out = pl.pallas_call(
        mlp_kernel,
        out_shape=jax.ShapeDtypeStruct((padded_batch, OUT_PAD), jnp.float32),
        grid_spec=pltpu.PrefetchScalarGridSpec(
            num_scalar_prefetch=0,
            grid=grid,
            in_specs=[
                pl.BlockSpec((tb, input_dim), lambda i: (i, 0)),     # x (streamed)
                pl.BlockSpec((input_dim, hidden), lambda i: (0, 0)), # w1 (resident)
                pl.BlockSpec((1, hidden), lambda i: (0, 0)),         # b1
                pl.BlockSpec((hidden, hidden), lambda i: (0, 0)),    # w2
                pl.BlockSpec((1, hidden), lambda i: (0, 0)),         # b2
                pl.BlockSpec((hidden, OUT_PAD), lambda i: (0, 0)),   # w3 (padded)
                pl.BlockSpec((1, OUT_PAD), lambda i: (0, 0)),        # b3 (padded)
            ],
            out_specs=pl.BlockSpec((tb, OUT_PAD), lambda i: (i, 0)),
        ),
        compiler_params=pltpu.CompilerParams(
            dimension_semantics=("parallel",),
            vmem_limit_bytes=48 * 1024 * 1024),
        cost_estimate=pl.CostEstimate(
            flops=flops, transcendentals=0, bytes_accessed=bytes_accessed),
    )(x_p, w1_p, b1, w2_p, b2, w3_p, b3_p)

    return out[:batch, :out_dim]


def init_params(key, input_dim=5, hidden_dim=64, output_dim=3, dtype=jnp.float32):
    """Deterministic init mimicking torch.nn.Linear (uniform +/- 1/sqrt(fan_in))."""
    def linear_init(k, fan_in, fan_out):
        kw, kb = jax.random.split(k)
        bound = 1.0 / jnp.sqrt(fan_in)
        # Stored as (in, out) so the kernel does x @ W.
        w = jax.random.uniform(kw, (fan_in, fan_out), dtype, -bound, bound)
        b = jax.random.uniform(kb, (1, fan_out), dtype, -bound, bound)
        return w, b

    k1, k2, k3 = jax.random.split(key, 3)
    w1, b1 = linear_init(k1, input_dim, hidden_dim)
    w2, b2 = linear_init(k2, hidden_dim, hidden_dim)
    w3, b3 = linear_init(k3, hidden_dim, output_dim)
    return (w1, b1, w2, b2, w3, b3)


def mlp_reference(x, params):
    """Pure-JAX reference with the same bf16-operand / f32-accumulate rounding."""
    w1, b1, w2, b2, w3, b3 = params
    bf = jnp.bfloat16

    def bdot(a, w):
        return jnp.dot(a.astype(bf), w.astype(bf),
                       preferred_element_type=jnp.float32)

    h1 = jnp.maximum(bdot(x, w1) + b1, 0.0)
    h2 = jnp.maximum(bdot(h1, w2) + b2, 0.0)
    return bdot(h2, w3) + b3


if __name__ == "__main__":
    key = jax.random.PRNGKey(0)
    kx, kp = jax.random.split(key)

    batch, input_dim, hidden_dim, output_dim = 8, 5, 64, 3
    x = jax.random.normal(kx, (batch, input_dim), jnp.float32)
    params = init_params(kp, input_dim, hidden_dim, output_dim)

    # 1) Single-tile path (batch smaller than the batch tile).
    out = jax.block_until_ready(mlp_forward(x, params))
    ref = mlp_reference(x, params)
    assert out.shape == (batch, output_dim)
    assert out.dtype == jnp.float32
    assert jnp.allclose(out, ref, atol=2e-2, rtol=2e-2), float(
        jnp.max(jnp.abs(out - ref)))

    # 2) Multi-step grid path (batch padding + resident weights across steps).
    x2 = jax.random.normal(jax.random.PRNGKey(1), (40, input_dim), jnp.float32)
    out2 = jax.block_until_ready(mlp_forward(x2, params, batch_tile=16))
    ref2 = mlp_reference(x2, params)
    assert out2.shape == (40, output_dim)
    assert jnp.allclose(out2, ref2, atol=2e-2, rtol=2e-2), float(
        jnp.max(jnp.abs(out2 - ref2)))

    # 3) Larger batch with default tile: exercises the megacore split
    #    (grid length >= 2) and batch padding of the last tile.
    x3 = jax.random.normal(jax.random.PRNGKey(2), (1000, input_dim), jnp.float32)
    out3 = jax.block_until_ready(mlp_forward(x3, params))
    ref3 = mlp_reference(x3, params)
    assert out3.shape == (1000, output_dim)
    assert jnp.allclose(out3, ref3, atol=2e-2, rtol=2e-2), float(
        jnp.max(jnp.abs(out3 - ref3)))

    print("KERNEL_OK")
</pallas_src>

<mosaic_0001>
module attributes {stable_mosaic.version = 11 : i64} {
  func.func @mlp_kernel(%arg0: i32, %arg1: memref<16x5xf32, #tpu.memory_space<vmem>>, %arg2: memref<5x64xbf16, #tpu.memory_space<vmem>>, %arg3: memref<1x64xf32, #tpu.memory_space<vmem>>, %arg4: memref<64x64xbf16, #tpu.memory_space<vmem>>, %arg5: memref<1x64xf32, #tpu.memory_space<vmem>>, %arg6: memref<64x8xbf16, #tpu.memory_space<vmem>>, %arg7: memref<1x8xf32, #tpu.memory_space<vmem>>, %arg8: memref<16x8xf32, #tpu.memory_space<vmem>>) attributes {dimension_semantics = [#tpu.dimension_semantics<parallel>], iteration_bounds = array<i64: 1>, scalar_prefetch = 0 : i64, scratch_operands = 0 : i64, tpu.core_type = #tpu.core_type<tc>, window_params = [{transform_indices = @transform_0, window_bounds = array<i64: 16, 5>}, {pipeline_mode = #tpu.pipeline_mode<synchronous>, transform_indices = @transform_1, window_bounds = array<i64: 5, 64>}, {pipeline_mode = #tpu.pipeline_mode<synchronous>, transform_indices = @transform_2, window_bounds = array<i64: 1, 64>}, {pipeline_mode = #tpu.pipeline_mode<synchronous>, transform_indices = @transform_3, window_bounds = array<i64: 64, 64>}, {pipeline_mode = #tpu.pipeline_mode<synchronous>, transform_indices = @transform_4, window_bounds = array<i64: 1, 64>}, {pipeline_mode = #tpu.pipeline_mode<synchronous>, transform_indices = @transform_5, window_bounds = array<i64: 64, 8>}, {pipeline_mode = #tpu.pipeline_mode<synchronous>, transform_indices = @transform_6, window_bounds = array<i64: 1, 8>}, {transform_indices = @transform_7, window_bounds = array<i64: 16, 8>}]} {
    %c0 = arith.constant 0 : index
    %c0_0 = arith.constant 0 : index
    %0 = vector.load %arg1[%c0, %c0_0] : memref<16x5xf32, #tpu.memory_space<vmem>>, vector<16x5xf32>
    %1 = arith.truncf %0 : vector<16x5xf32> to vector<16x5xbf16>
    %c0_1 = arith.constant 0 : index
    %c0_2 = arith.constant 0 : index
    %2 = vector.load %arg2[%c0_1, %c0_2] : memref<5x64xbf16, #tpu.memory_space<vmem>>, vector<5x64xbf16>
    %cst = arith.constant dense<0.000000e+00> : vector<16x64xf32>
    %3 = tpu.matmul %1, %2, %cst {dimension_numbers = #tpu.dot_dimension_numbers<[1], [0], [0], [1], [0, 0, 1, 1], [], []>} : vector<16x5xbf16>, vector<5x64xbf16>, vector<16x64xf32> -> vector<16x64xf32>
    %c0_3 = arith.constant 0 : index
    %c0_4 = arith.constant 0 : index
    %4 = vector.load %arg3[%c0_3, %c0_4] : memref<1x64xf32, #tpu.memory_space<vmem>>, vector<1x64xf32>
    %5 = vector.broadcast %4 : vector<1x64xf32> to vector<16x64xf32>
    %6 = arith.addf %3, %5 : vector<16x64xf32>
    %cst_5 = arith.constant 0.000000e+00 : f32
    %7 = vector.broadcast %cst_5 : f32 to vector<16x64xf32>
    %8 = arith.maximumf %6, %7 : vector<16x64xf32>
    %9 = arith.truncf %8 : vector<16x64xf32> to vector<16x64xbf16>
    %c0_6 = arith.constant 0 : index
    %c0_7 = arith.constant 0 : index
    %10 = vector.load %arg4[%c0_6, %c0_7] : memref<64x64xbf16, #tpu.memory_space<vmem>>, vector<64x64xbf16>
    %cst_8 = arith.constant dense<0.000000e+00> : vector<16x64xf32>
    %11 = tpu.matmul %9, %10, %cst_8 {dimension_numbers = #tpu.dot_dimension_numbers<[1], [0], [0], [1], [0, 0, 1, 1], [], []>} : vector<16x64xbf16>, vector<64x64xbf16>, vector<16x64xf32> -> vector<16x64xf32>
    %c0_9 = arith.constant 0 : index
    %c0_10 = arith.constant 0 : index
    %12 = vector.load %arg5[%c0_9, %c0_10] : memref<1x64xf32, #tpu.memory_space<vmem>>, vector<1x64xf32>
    %13 = vector.broadcast %12 : vector<1x64xf32> to vector<16x64xf32>
    %14 = arith.addf %11, %13 : vector<16x64xf32>
    %cst_11 = arith.constant 0.000000e+00 : f32
    %15 = vector.broadcast %cst_11 : f32 to vector<16x64xf32>
    %16 = arith.maximumf %14, %15 : vector<16x64xf32>
    %17 = arith.truncf %16 : vector<16x64xf32> to vector<16x64xbf16>
    %c0_12 = arith.constant 0 : index
    %c0_13 = arith.constant 0 : index
    %18 = vector.load %arg6[%c0_12, %c0_13] : memref<64x8xbf16, #tpu.memory_space<vmem>>, vector<64x8xbf16>
    %cst_14 = arith.constant dense<0.000000e+00> : vector<16x8xf32>
    %19 = tpu.matmul %17, %18, %cst_14 {dimension_numbers = #tpu.dot_dimension_numbers<[1], [0], [0], [1], [0, 0, 1, 1], [], []>} : vector<16x64xbf16>, vector<64x8xbf16>, vector<16x8xf32> -> vector<16x8xf32>
    %c0_15 = arith.constant 0 : index
    %c0_16 = arith.constant 0 : index
    %20 = vector.load %arg7[%c0_15, %c0_16] : memref<1x8xf32, #tpu.memory_space<vmem>>, vector<1x8xf32>
    %21 = vector.broadcast %20 : vector<1x8xf32> to vector<16x8xf32>
    %22 = arith.addf %19, %21 : vector<16x8xf32>
    %c0_17 = arith.constant 0 : index
    %c0_18 = arith.constant 0 : index
    %23 = vector.load %arg8[%c0_17, %c0_18] : memref<16x8xf32, #tpu.memory_space<vmem>>, vector<16x8xf32>
    tpu.vector_store %arg8[%c0_17, %c0_18], %22 {strides = array<i32>} : memref<16x8xf32, #tpu.memory_space<vmem>>, vector<16x8xf32>,
    return
  }
  func.func @transform_0(%arg0: i32) -> (i32, i32) {
    %c0_i32 = arith.constant 0 : i32
    %c0_i32_0 = arith.constant 0 : i32
    return %arg0, %c0_i32 : i32, i32
  }
  func.func @transform_1(%arg0: i32) -> (i32, i32) {
    %c0_i32 = arith.constant 0 : i32
    %c0_i32_0 = arith.constant 0 : i32
    %c0_i32_1 = arith.constant 0 : i32
    return %c0_i32, %c0_i32_0 : i32, i32
  }
  func.func @transform_2(%arg0: i32) -> (i32, i32) {
    %c0_i32 = arith.constant 0 : i32
    %c0_i32_0 = arith.constant 0 : i32
    %c0_i32_1 = arith.constant 0 : i32
    return %c0_i32, %c0_i32_0 : i32, i32
  }
  func.func @transform_3(%arg0: i32) -> (i32, i32) {
    %c0_i32 = arith.constant 0 : i32
    %c0_i32_0 = arith.constant 0 : i32
    %c0_i32_1 = arith.constant 0 : i32
    return %c0_i32, %c0_i32_0 : i32, i32
  }
  func.func @transform_4(%arg0: i32) -> (i32, i32) {
    %c0_i32 = arith.constant 0 : i32
    %c0_i32_0 = arith.constant 0 : i32
    %c0_i32_1 = arith.constant 0 : i32
    return %c0_i32, %c0_i32_0 : i32, i32
  }
  func.func @transform_5(%arg0: i32) -> (i32, i32) {
    %c0_i32 = arith.constant 0 : i32
    %c0_i32_0 = arith.constant 0 : i32
    %c0_i32_1 = arith.constant 0 : i32
    return %c0_i32, %c0_i32_0 : i32, i32
  }
  func.func @transform_6(%arg0: i32) -> (i32, i32) {
    %c0_i32 = arith.constant 0 : i32
    %c0_i32_0 = arith.constant 0 : i32
    %c0_i32_1 = arith.constant 0 : i32
    return %c0_i32, %c0_i32_0 : i32, i32
  }
  func.func @transform_7(%arg0: i32) -> (i32, i32) {
    %c0_i32 = arith.constant 0 : i32
    %c0_i32_0 = arith.constant 0 : i32
    return %arg0, %c0_i32 : i32, i32
  }
}

</mosaic_0001>

<bundles_post_ra>
// kernel: tpu_custom_call.1
= control target key start
LH: loop header
LB: loop body
LE: loop exit
PB: predicated region body
PF: predicated region fallthrough
CT: control target
= control target key end

     0   :  { %vm42_vm0 = vcmask 1041408   ;;  %vm43_vm1 = vcmask 1042432   ;;  %v337_v0 = vmov 0.0   ;;  %v338_v2 = vmov 65535   ;;  %s430_s1 = inlined_call_operand.vmem [shape: bf16[5,64], index: 1, kind: input, shape index: {}]   ;;  %s431_s0 = inlined_call_operand.vmem [shape: f32[16,5], index: 0, kind: input, shape index: {}]   ;;  %s432_s3 = inlined_call_operand.vmem [shape: bf16[64,64], index: 3, kind: input, shape index: {}]   ;;  %s433_s5 = inlined_call_operand.vmem [shape: bf16[64,8], index: 5, kind: input, shape index: {}]   ;;  %s434_s2 = inlined_call_operand.vmem [shape: f32[1,64], index: 2, kind: input, shape index: {}]   ;;  %s435_s4 = inlined_call_operand.vmem [shape: f32[1,64], index: 4, kind: input, shape index: {}]   ;;  %s436_s6 = inlined_call_operand.vmem [shape: f32[1,8], index: 6, kind: input, shape index: {}]   ;;  %s437_s7 = inlined_call_operand.vmem [shape: f32[16,8], index: 7, kind: output, shape index: {}]  }
   0x1   :  { %296 = vmatprep.subr.bf16.mxu0 %v337_v0  ;;  %v30_v1 = vld [vmem:[%s430_s1] sm:$0x7]  ;;  %v44_v3 = vsel %vm42_vm0, 4294967295, %v338_v2  ;;  %v28_v5 = vld [vmem:[%s431_s0 + $0x8] sm:$0xff]  ;;  %302 = vmatprep.subr.bf16.mxu1 %v337_v0  ;;  %vm339_vm2 = vmmov 0   ;;  %v329_v8 = vld [vmem:[%s432_s3 + $0x18] sm:$0xff]  }
   0x2   :  { %v27_v4 = vld [vmem:[%s431_s0] sm:$0xff]  ;;  %v45_v6 = vsel %vm43_vm1, %v44_v3, 0  ;;  %298 = vmatprep.mubr.msk.bf16.mxu0 %vm339_vm2, %v337_v0  ;;  %310 = vmatprep.mubr.msk.bf16.mxu1 %vm339_vm2, %v337_v0  ;;  %vm38_vm3 = vcmask 39936   ;;  %v330_v10 = vld [vmem:[%s432_s3 + $0x10] sm:$0xff]   ;;  %v331_v11 = vld [vmem:[%s432_s3 + $0x8] sm:$0xff]   ;;  %vm132_vm4 = vcmask 523264  }
   0x3   :  { %v47_v7 = vand.u32 %v45_v6, %v30_v1  ;;  %v29_v9 = vpack.c.bf16 %v28_v5, %v27_v4  ;;  %303 = vmatpush3.bf16.msra.mxu1 %v329_v8  ;;  %v332_v12 = vld [vmem:[%s432_s3] sm:$0xff]   ;;  %v333_v13 = vld [vmem:[%s433_s5 + $0x18] sm:$0xff]   ;;  %v334_v24 = vld [vmem:[%s433_s5 + $0x10] sm:$0xff]   ;;  %vm263_vm5 = vcmask 64512  }
   0x4   :  { %304 = vmatprep.subr.bf16.mxu1 %v337_v0  ;;  %v270_v14 = vld [vmem:[%s434_s2] ss:$0 sm:$0xff]  ;;  %v335_v25 = vld [vmem:[%s433_s5 + $0x8] sm:$0xff]  }
   0x5   :  { %297 = vmatpush3.bf16.msra.mxu0 %v47_v7  ;;  %v336_v26 = vld [vmem:[%s433_s5] sm:$0xff]  }
   0x6   :  { %314 = vmatprep.subr.bf16.mxu0 %v337_v0  ;;  %v272_v27 = vld [vmem:[%s435_s4] ss:$0 sm:$0xff] }
   0x7   :  { %305 = vmatpush3.bf16.msra.mxu1 %v330_v10  ;;  %v278_v37 = vld [vmem:[%s436_s6] ss:$0 sm:$0xff] }
   0x8   :  { %299 = vmatmul.mubr.msk.bf16.vlgmr.msra.gmra.mxu0 %vm38_vm3, %v29_v9  ;;  %306 = vmatprep.subr.bf16.mxu1 %v337_v0 }
   0x9   :  { %322 = vmatprep.mubr.msk.bf16.mxu0 %vm339_vm2, %v337_v0  ;;  %315 = vmatpush3.bf16.msra.mxu0 %v333_v13 }
   0xa   :  { %316 = vmatprep.subr.bf16.mxu0 %v337_v0 }
   0xb   :  { %307 = vmatpush3.bf16.msra.mxu1 %v331_v11 }
   0xc   :  { %308 = vmatprep.subr.bf16.mxu1 %v337_v0 }
   0xd   :  { %317 = vmatpush3.bf16.msra.mxu0 %v334_v24 }
   0xe   :  { %318 = vmatprep.subr.bf16.mxu0 %v337_v0 }
   0xf   :  { %309 = vmatpush3.bf16.msra.mxu1 %v332_v12 }
  0x11   :  { %319 = vmatpush3.bf16.msra.mxu0 %v335_v25 }
  0x12   :  { %320 = vmatprep.subr.bf16.mxu0 %v337_v0 }
  0x15   :  { %321 = vmatpush3.bf16.msra.mxu0 %v336_v26 }
  0xc8   :  { %v83_v15 = vpop.f32.mrf.mxu0 }
  0xc9   :  { %v84_v17 = vadd.f32 %v270_v14, %v83_v15 }
  0xca   :  { %v300_v16 = vpop.f32.mrf.mxu0 }
  0xcb   :  { %v90_v21 = vmax.f32 %v84_v17, 0.0 }
  0xcc   :  { %v86_v18 = vpop.f32.mrf.mxu0 }
  0xcd   :  { %v87_v19 = vadd.f32 %v270_v14, %v86_v18 }
  0xce   :  { %v301_v20 = vpop.f32.mrf.mxu0 }
  0xcf   :  { %v91_v22 = vmax.f32 %v87_v19, 0.0 }
  0xd1   :  { %v92_v23 = vpack.c.bf16 %v91_v22, %v90_v21 }
  0xd3   :  { %311 = vmatmul.mubr.msk.bf16.vlgmr.msra.gmra.mxu1 %vm132_vm4, %v92_v23 }
 0x193   :  { %v170_v28 = vpop.f32.mrf.mxu1 }
 0x194   :  { %v171_v30 = vadd.f32 %v272_v27, %v170_v28 }
 0x195   :  { %v312_v29 = vpop.f32.mrf.mxu1 }
 0x196   :  { %v177_v34 = vmax.f32 %v171_v30, 0.0 }
 0x197   :  { %v173_v31 = vpop.f32.mrf.mxu1 }
 0x198   :  { %v174_v32 = vadd.f32 %v272_v27, %v173_v31 }
 0x199   :  { %v313_v33 = vpop.f32.mrf.mxu1 }
 0x19a   :  { %v178_v35 = vmax.f32 %v174_v32, 0.0 }
 0x19c   :  { %v179_v36 = vpack.c.bf16 %v178_v35, %v177_v34 }
 0x19e   :  { %323 = vmatmul.mubr.msk.bf16.vlgmr.msra.gmra.mxu0 %vm132_vm4, %v179_v36 }
 0x25e   :  { %v256_v38 = vpop.f32.mrf.mxu0 }
 0x25f   :  { %v257_v39 = vadd.f32 %v278_v37, %v256_v38 }
 0x260   :  { %v324_v40 = vpop.f32.mrf.mxu0 }
 0x261   :  { %264 = vst.msk [vmem:[%s437_s7] sm:$0xff] %vm263_vm5, %v257_v39 }
 0x262   :  { %v259_v41 = vpop.f32.mrf.mxu0 }
 0x263   :  { %v260_v42 = vadd.f32 %v278_v37, %v259_v41 }
 0x264   :  { %v325_v43 = vpop.f32.mrf.mxu0 }
 0x265   :  { %265 = vst.msk [vmem:[%s437_s7 + $0x8] sm:$0xff] %vm263_vm5, %v260_v42 }

</bundles_post_ra>
